<compile_context>
chip_gen: v7x
topology: tpu7x:2x2x1
jax: 0.10.0
libtpu: 0.0.40
codegen_flags: <defaults>
</compile_context>

<pallas_src>
import jax
import jax.numpy as jnp
from jax.experimental import pallas as pl
from jax.experimental.pallas import tpu as pltpu


def _round_up(x, m):
    return (x + m - 1) // m * m


def qfunc_kernel(obs_ref, act_ref, w1o_ref, w1a_ref, b1_ref,
                 w2_ref, b2_ref, w3_ref, b3_ref, out_ref):
    # Layer 1: two accumulated MXU dots (split w1), f32 accumulation.
    #   (H1, d_obs) @ (d_obs, tb) + (H1, d_act) @ (d_act, tb) -> (H1, tb)
    h = (jnp.dot(w1o_ref[...], obs_ref[...],
                 preferred_element_type=jnp.float32)
         + jnp.dot(w1a_ref[...], act_ref[...],
                   preferred_element_type=jnp.float32)
         + b1_ref[...])                         # bias broadcasts over lanes
    h = jnp.maximum(h, 0.0)                     # ReLU in f32 (VPU)
    h = h.astype(w2_ref.dtype)                  # cast only right before MXU

    # Layer 2: (H2, H1) @ (H1, tb) -> (H2, tb)
    h = jnp.dot(w2_ref[...], h,
                preferred_element_type=jnp.float32) + b2_ref[...]
    h = jnp.maximum(h, 0.0)
    h = h.astype(w3_ref.dtype)

    # Output layer (out_features == 1): (1, H2) @ (H2, tb) -> lane-dense (1, tb)
    out_ref[...] = (jnp.dot(w3_ref[...], h,
                            preferred_element_type=jnp.float32)
                    + b3_ref[...])


def mlp_qfunction(obs, act, params, *, tb=4096, compute_dtype=jnp.float32):
    """Pallas forward of MLPQFunction. Returns q of shape (B,)."""
    w1, b1, w2, b2, w3, b3 = params
    B = obs.shape[0]
    d_obs, d_act = obs.shape[1], act.shape[1]
    H1, H2 = w1.shape[1], w2.shape[1]

    # ---- batch tiling: large, 128-aligned tiles; >=2 blocks when possible ----
    b128 = _round_up(B, 128)
    tb_eff = min(_round_up(tb, 128), b128)
    # v7x has 2 TensorCores: prefer at least 2 grid blocks when batch allows.
    if b128 // tb_eff < 2 and b128 >= 256:
        tb_eff = _round_up((b128 + 1) // 2, 128)
    B_pad = _round_up(B, tb_eff)
    nb = B_pad // tb_eff

    cd = compute_dtype
    # Batch-on-lanes activations: (features, batch). No concat, no pad-to-128.
    obs_t = jnp.pad(obs.astype(cd).T, ((0, 0), (0, B_pad - B)))   # (d_obs, B_pad)
    act_t = jnp.pad(act.astype(cd).T, ((0, 0), (0, B_pad - B)))   # (d_act, B_pad)

    # Pre-transposed weights (out, in); w1 split into obs/act halves.
    w1o = w1[:d_obs].T.astype(cd)            # (H1, d_obs)
    w1a = w1[d_obs:].T.astype(cd)            # (H1, d_act)
    w2t = w2.T.astype(cd)                    # (H2, H1)
    w3t = w3.T.astype(cd)                    # (1, H2)
    # Column biases (broadcast over the lane/batch axis); stay f32.
    b1c = b1.reshape(H1, 1).astype(jnp.float32)
    b2c = b2.reshape(H2, 1).astype(jnp.float32)
    b3c = b3.reshape(1, 1).astype(jnp.float32)

    itemsize = jnp.dtype(cd).itemsize
    weight_bytes = ((w1o.size + w1a.size + w2t.size + w3t.size) * itemsize
                    + (b1c.size + b2c.size + b3c.size) * 4)
    cost = pl.CostEstimate(
        flops=2 * B_pad * ((d_obs + d_act) * H1 + H1 * H2 + H2),
        transcendentals=0,
        bytes_accessed=(B_pad * (d_obs + d_act) * itemsize   # activation reads
                        + B_pad * 4                          # q writes
                        + weight_bytes),
    )

    # Constant index_map keeps weight/bias blocks resident across grid steps.
    resident = lambda a: pl.BlockSpec(a.shape, lambda i: (0, 0))

    q = pl.pallas_call(
        qfunc_kernel,
        out_shape=jax.ShapeDtypeStruct((1, B_pad), jnp.float32),
        grid_spec=pltpu.PrefetchScalarGridSpec(
            num_scalar_prefetch=0,
            grid=(nb,),
            in_specs=[
                pl.BlockSpec((d_obs, tb_eff), lambda i: (0, i)),   # obs tile
                pl.BlockSpec((d_act, tb_eff), lambda i: (0, i)),   # act tile
                resident(w1o), resident(w1a), resident(b1c),
                resident(w2t), resident(b2c),
                resident(w3t), resident(b3c),
            ],
            out_specs=pl.BlockSpec((1, tb_eff), lambda i: (0, i)),
        ),
        compiler_params=pltpu.CompilerParams(
            dimension_semantics=("parallel",)),
        cost_estimate=cost,
    )(obs_t, act_t, w1o, w1a, b1c, w2t, b2c, w3t, b3c)

    return q[0, :B]   # torch.squeeze(q, -1); padded batch columns are dropped


def init_params(key, obs_dim, act_dim, hidden_sizes):
    """Deterministic synthetic init, (in, out) weight layout (torch-transposed)."""
    sizes = [obs_dim + act_dim] + list(hidden_sizes) + [1]
    keys = jax.random.split(key, 2 * (len(sizes) - 1))
    params = []
    for li in range(len(sizes) - 1):
        fan_in, fan_out = sizes[li], sizes[li + 1]
        bound = 1.0 / (fan_in ** 0.5)
        w = jax.random.uniform(keys[2 * li], (fan_in, fan_out),
                               jnp.float32, -bound, bound)
        b = jax.random.uniform(keys[2 * li + 1], (1, fan_out),
                               jnp.float32, -bound, bound)
        params += [w, b]
    return tuple(params)   # (w1, b1, w2, b2, w3, b3)


def reference_qfunction(obs, act, params):
    """Pure-JAX reference matching the PyTorch forward."""
    w1, b1, w2, b2, w3, b3 = params
    x = jnp.concatenate([obs, act], axis=-1)
    h = jax.nn.relu(x @ w1 + b1)
    h = jax.nn.relu(h @ w2 + b2)
    return jnp.squeeze(h @ w3 + b3, -1)


if __name__ == "__main__":
    obs_dim, act_dim = 8, 4
    hidden_sizes = (32, 32)

    key = jax.random.PRNGKey(0)
    k_obs, k_act, k_par = jax.random.split(key, 3)
    params = init_params(k_par, obs_dim, act_dim, hidden_sizes)

    # Small-batch check (single grid block).
    batch = 16
    obs = jax.random.normal(k_obs, (batch, obs_dim), jnp.float32)
    act = jax.random.normal(k_act, (batch, act_dim), jnp.float32)
    q_ref = reference_qfunction(obs, act, params)

    q = jax.block_until_ready(mlp_qfunction(obs, act, params))
    assert q.shape == (batch,)
    assert jnp.allclose(q, q_ref, atol=1e-5, rtol=1e-5)

    # bf16 operand path (halves activation HBM bytes); f32 accumulation.
    # bf16 operands -> ~1e-1 tolerance is expected; document for SAC loss use.
    q_bf16 = jax.block_until_ready(
        mlp_qfunction(obs, act, params, compute_dtype=jnp.bfloat16))
    assert q_bf16.shape == (batch,)
    assert jnp.allclose(q_bf16, q_ref, atol=1e-1, rtol=1e-1)

    # Larger, non-aligned batch: exercises batch padding and the nb>=2 path
    # (both v7x TensorCores get a block via the "parallel" grid axis).
    batch2 = 300
    obs2 = jax.random.normal(k_obs, (batch2, obs_dim), jnp.float32)
    act2 = jax.random.normal(k_act, (batch2, act_dim), jnp.float32)
    q2_ref = reference_qfunction(obs2, act2, params)
    q2 = jax.block_until_ready(mlp_qfunction(obs2, act2, params))
    assert q2.shape == (batch2,)
    assert jnp.allclose(q2, q2_ref, atol=1e-5, rtol=1e-5)

    print("KERNEL_OK")
</pallas_src>

<mosaic_0001>
module attributes {stable_mosaic.version = 11 : i64} {
  func.func @qfunc_kernel(%arg0: i32, %arg1: memref<8x128xf32, #tpu.memory_space<vmem>>, %arg2: memref<4x128xf32, #tpu.memory_space<vmem>>, %arg3: memref<32x8xf32, #tpu.memory_space<vmem>>, %arg4: memref<32x4xf32, #tpu.memory_space<vmem>>, %arg5: memref<32x1xf32, #tpu.memory_space<vmem>>, %arg6: memref<32x32xf32, #tpu.memory_space<vmem>>, %arg7: memref<32x1xf32, #tpu.memory_space<vmem>>, %arg8: memref<1x32xf32, #tpu.memory_space<vmem>>, %arg9: memref<1x1xf32, #tpu.memory_space<vmem>>, %arg10: memref<1x128xf32, #tpu.memory_space<vmem>>) attributes {dimension_semantics = [#tpu.dimension_semantics<parallel>], iteration_bounds = array<i64: 1>, scalar_prefetch = 0 : i64, scratch_operands = 0 : i64, tpu.core_type = #tpu.core_type<tc>, window_params = [{transform_indices = @transform_0, window_bounds = array<i64: 8, 128>}, {transform_indices = @transform_1, window_bounds = array<i64: 4, 128>}, {pipeline_mode = #tpu.pipeline_mode<synchronous>, transform_indices = @transform_2, window_bounds = array<i64: 32, 8>}, {pipeline_mode = #tpu.pipeline_mode<synchronous>, transform_indices = @transform_3, window_bounds = array<i64: 32, 4>}, {pipeline_mode = #tpu.pipeline_mode<synchronous>, transform_indices = @transform_4, window_bounds = array<i64: 32, 1>}, {pipeline_mode = #tpu.pipeline_mode<synchronous>, transform_indices = @transform_5, window_bounds = array<i64: 32, 32>}, {pipeline_mode = #tpu.pipeline_mode<synchronous>, transform_indices = @transform_6, window_bounds = array<i64: 32, 1>}, {pipeline_mode = #tpu.pipeline_mode<synchronous>, transform_indices = @transform_7, window_bounds = array<i64: 1, 32>}, {pipeline_mode = #tpu.pipeline_mode<synchronous>, transform_indices = @transform_8, window_bounds = array<i64: 1, 1>}, {transform_indices = @transform_9, window_bounds = array<i64: 1, 128>}]} {
    %c0 = arith.constant 0 : index
    %c0_0 = arith.constant 0 : index
    %0 = vector.load %arg3[%c0, %c0_0] : memref<32x8xf32, #tpu.memory_space<vmem>>, vector<32x8xf32>
    %c0_1 = arith.constant 0 : index
    %c0_2 = arith.constant 0 : index
    %1 = vector.load %arg1[%c0_1, %c0_2] : memref<8x128xf32, #tpu.memory_space<vmem>>, vector<8x128xf32>
    %cst = arith.constant dense<0.000000e+00> : vector<32x128xf32>
    %2 = tpu.matmul %0, %1, %cst {dimension_numbers = #tpu.dot_dimension_numbers<[1], [0], [0], [1], [0, 0, 1, 1], [], []>} : vector<32x8xf32>, vector<8x128xf32>, vector<32x128xf32> -> vector<32x128xf32>
    %c0_3 = arith.constant 0 : index
    %c0_4 = arith.constant 0 : index
    %3 = vector.load %arg4[%c0_3, %c0_4] : memref<32x4xf32, #tpu.memory_space<vmem>>, vector<32x4xf32>
    %c0_5 = arith.constant 0 : index
    %c0_6 = arith.constant 0 : index
    %4 = vector.load %arg2[%c0_5, %c0_6] : memref<4x128xf32, #tpu.memory_space<vmem>>, vector<4x128xf32>
    %cst_7 = arith.constant dense<0.000000e+00> : vector<32x128xf32>
    %5 = tpu.matmul %3, %4, %cst_7 {dimension_numbers = #tpu.dot_dimension_numbers<[1], [0], [0], [1], [0, 0, 1, 1], [], []>} : vector<32x4xf32>, vector<4x128xf32>, vector<32x128xf32> -> vector<32x128xf32>
    %6 = arith.addf %2, %5 : vector<32x128xf32>
    %c0_8 = arith.constant 0 : index
    %c0_9 = arith.constant 0 : index
    %7 = vector.load %arg5[%c0_8, %c0_9] : memref<32x1xf32, #tpu.memory_space<vmem>>, vector<32x1xf32>
    %8 = vector.broadcast %7 : vector<32x1xf32> to vector<32x128xf32>
    %9 = arith.addf %6, %8 : vector<32x128xf32>
    %cst_10 = arith.constant 0.000000e+00 : f32
    %10 = vector.broadcast %cst_10 : f32 to vector<32x128xf32>
    %11 = arith.maximumf %9, %10 : vector<32x128xf32>
    %c0_11 = arith.constant 0 : index
    %c0_12 = arith.constant 0 : index
    %12 = vector.load %arg6[%c0_11, %c0_12] : memref<32x32xf32, #tpu.memory_space<vmem>>, vector<32x32xf32>
    %cst_13 = arith.constant dense<0.000000e+00> : vector<32x128xf32>
    %13 = tpu.matmul %12, %11, %cst_13 {dimension_numbers = #tpu.dot_dimension_numbers<[1], [0], [0], [1], [0, 0, 1, 1], [], []>} : vector<32x32xf32>, vector<32x128xf32>, vector<32x128xf32> -> vector<32x128xf32>
    %c0_14 = arith.constant 0 : index
    %c0_15 = arith.constant 0 : index
    %14 = vector.load %arg7[%c0_14, %c0_15] : memref<32x1xf32, #tpu.memory_space<vmem>>, vector<32x1xf32>
    %15 = vector.broadcast %14 : vector<32x1xf32> to vector<32x128xf32>
    %16 = arith.addf %13, %15 : vector<32x128xf32>
    %cst_16 = arith.constant 0.000000e+00 : f32
    %17 = vector.broadcast %cst_16 : f32 to vector<32x128xf32>
    %18 = arith.maximumf %16, %17 : vector<32x128xf32>
    %c0_17 = arith.constant 0 : index
    %c0_18 = arith.constant 0 : index
    %19 = vector.load %arg8[%c0_17, %c0_18] : memref<1x32xf32, #tpu.memory_space<vmem>>, vector<1x32xf32>
    %cst_19 = arith.constant dense<0.000000e+00> : vector<1x128xf32>
    %20 = tpu.matmul %19, %18, %cst_19 {dimension_numbers = #tpu.dot_dimension_numbers<[1], [0], [0], [1], [0, 0, 1, 1], [], []>} : vector<1x32xf32>, vector<32x128xf32>, vector<1x128xf32> -> vector<1x128xf32>
    %c0_20 = arith.constant 0 : index
    %c0_21 = arith.constant 0 : index
    %21 = vector.load %arg9[%c0_20, %c0_21] : memref<1x1xf32, #tpu.memory_space<vmem>>, vector<1x1xf32>
    %22 = vector.broadcast %21 : vector<1x1xf32> to vector<1x128xf32>
    %23 = arith.addf %20, %22 : vector<1x128xf32>
    %c0_22 = arith.constant 0 : index
    %c0_23 = arith.constant 0 : index
    %24 = vector.load %arg10[%c0_22, %c0_23] : memref<1x128xf32, #tpu.memory_space<vmem>>, vector<1x128xf32>
    tpu.vector_store %arg10[%c0_22, %c0_23], %23 {strides = array<i32>} : memref<1x128xf32, #tpu.memory_space<vmem>>, vector<1x128xf32>,
    return
  }
  func.func @transform_0(%arg0: i32) -> (i32, i32) {
    %c0_i32 = arith.constant 0 : i32
    %c0_i32_0 = arith.constant 0 : i32
    return %c0_i32, %arg0 : i32, i32
  }
  func.func @transform_1(%arg0: i32) -> (i32, i32) {
    %c0_i32 = arith.constant 0 : i32
    %c0_i32_0 = arith.constant 0 : i32
    return %c0_i32, %arg0 : i32, i32
  }
  func.func @transform_2(%arg0: i32) -> (i32, i32) {
    %c0_i32 = arith.constant 0 : i32
    %c0_i32_0 = arith.constant 0 : i32
    %c0_i32_1 = arith.constant 0 : i32
    return %c0_i32, %c0_i32_0 : i32, i32
  }
  func.func @transform_3(%arg0: i32) -> (i32, i32) {
    %c0_i32 = arith.constant 0 : i32
    %c0_i32_0 = arith.constant 0 : i32
    %c0_i32_1 = arith.constant 0 : i32
    return %c0_i32, %c0_i32_0 : i32, i32
  }
  func.func @transform_4(%arg0: i32) -> (i32, i32) {
    %c0_i32 = arith.constant 0 : i32
    %c0_i32_0 = arith.constant 0 : i32
    %c0_i32_1 = arith.constant 0 : i32
    return %c0_i32, %c0_i32_0 : i32, i32
  }
  func.func @transform_5(%arg0: i32) -> (i32, i32) {
    %c0_i32 = arith.constant 0 : i32
    %c0_i32_0 = arith.constant 0 : i32
    %c0_i32_1 = arith.constant 0 : i32
    return %c0_i32, %c0_i32_0 : i32, i32
  }
  func.func @transform_6(%arg0: i32) -> (i32, i32) {
    %c0_i32 = arith.constant 0 : i32
    %c0_i32_0 = arith.constant 0 : i32
    %c0_i32_1 = arith.constant 0 : i32
    return %c0_i32, %c0_i32_0 : i32, i32
  }
  func.func @transform_7(%arg0: i32) -> (i32, i32) {
    %c0_i32 = arith.constant 0 : i32
    %c0_i32_0 = arith.constant 0 : i32
    %c0_i32_1 = arith.constant 0 : i32
    return %c0_i32, %c0_i32_0 : i32, i32
  }
  func.func @transform_8(%arg0: i32) -> (i32, i32) {
    %c0_i32 = arith.constant 0 : i32
    %c0_i32_0 = arith.constant 0 : i32
    %c0_i32_1 = arith.constant 0 : i32
    return %c0_i32, %c0_i32_0 : i32, i32
  }
  func.func @transform_9(%arg0: i32) -> (i32, i32) {
    %c0_i32 = arith.constant 0 : i32
    %c0_i32_0 = arith.constant 0 : i32
    return %c0_i32, %arg0 : i32, i32
  }
}

</mosaic_0001>

<bundles_post_ra>
// kernel: tpu_custom_call.1
= control target key start
LH: loop header
LB: loop body
LE: loop exit
PB: predicated region body
PF: predicated region fallthrough
CT: control target
= control target key end

     0   :  { %s785_s0 = inlined_call_operand.vmem [shape: f32[8,128], index: 0, kind: input, shape index: {}]   ;;  %s786_s1 = inlined_call_operand.vmem [shape: f32[4,128], index: 1, kind: input, shape index: {}]   ;;  %s787_s2 = inlined_call_operand.vmem [shape: f32[32,8], index: 2, kind: input, shape index: {}]   ;;  %s788_s3 = inlined_call_operand.vmem [shape: f32[32,4], index: 3, kind: input, shape index: {}]   ;;  %s789_s4 = inlined_call_operand.vmem [shape: f32[32,1], index: 4, kind: input, shape index: {}]   ;;  %s790_s5 = inlined_call_operand.vmem [shape: f32[32,32], index: 5, kind: input, shape index: {}]   ;;  %s791_s6 = inlined_call_operand.vmem [shape: f32[32,1], index: 6, kind: input, shape index: {}]   ;;  %s792_s7 = inlined_call_operand.vmem [shape: f32[1,32], index: 7, kind: input, shape index: {}]   ;;  %s793_s8 = inlined_call_operand.<no memory space> [shape: f32[1,1], index: 8, kind: input, shape index: {}]   ;;  %s794_s9 = inlined_call_operand.hbm [shape: f32[1,128], index: 9, kind: output, shape index: {}]  }
   0x1   :  { %v14_v0 = vstv %s793_s8 }
   0x2   :  { %15 = vst [vmem:[#allocation2] sm:$0x1] %v14_v0 }
   0x3   :  { %v44_v1 = vld [vmem:[%s786_s1] sm:$0xf]  ;;  %vm58_vm0 = vcmask 1043456   ;;  %vm45_vm1 = vcmask 31744   ;;  %v41_v3 = vld [vmem:[%s788_s3 + $0x8] sm:$0xff]  ;;  %v42_v5 = vld [vmem:[%s788_s3 + $0x10] sm:$0xff] }
   0x4   :  { %v40_v2 = vld [vmem:[%s788_s3] sm:$0xff]  ;;  %543 = vmatprep.subr.msk.mxu0 %vm58_vm0, %v44_v1  ;;  %v633_v6 = vmov 0   ;;  %v43_v8 = vld [vmem:[%s788_s3 + $0x18] sm:$0xff]  ;;  %v247_v9 = vld [vmem:[%s789_s4 + $0x10] sm:$0xff]  ;;  %vm147_vm2 = vcmask 64512  }
   0x5   :  { %545 = vmatprep.mubr.msk.f32.mxu0 %vm45_vm1, %v40_v2  ;;  %v39_v4 = vld [vmem:[%s785_s0] sm:$0xff]  ;;  %544 = vmatpush3.msk.msra.mxu0 %vm58_vm0, %v44_v1  ;;  %v246_v11 = vld [vmem:[%s789_s4 + $0x8] sm:$0xff] }
   0x6   :  { %607 = vset.pattern.permute.xlu0 %v633_v6  ;;  %546 = vmatmul.mubr.msk.f32.vlgmr.msra.gmra.mrb[0].mxu0 %vm45_vm1, %v41_v3  ;;  %v245_v7 = vld [vmem:[%s789_s4] sm:$0xff] }
   0x7   :  { %551 = vmatprep.subr.mxu0 %v39_v4  ;;  %548 = vmatprep.mubr.msk.f32.mxu0 %vm45_vm1, %v42_v5  ;;  %v35_v10 = vld [vmem:[%s787_s2] sm:$0xff] }
   0x8   :  { %552 = vmatpush3.msra.mxu0 %v39_v4  ;;  %251 = vperm.xlu0 %607, %v245_v7  }
   0x9   :  { %608 = vset.pattern.permute.xlu1 %v633_v6 }
   0xa   :  { %261 = vperm.xlu1 %608, %v247_v9  }
   0xb   :  { %16 = vsyncpa [#allocation4], 0  ;;  %549 = vmatmul.mubr.msk.f32.gmra.mrb[2].mxu0 %vm45_vm1, %v43_v8  ;;  %v248_v12 = vld [vmem:[%s789_s4 + $0x18] sm:$0xff]  ;;  %v36_v13 = vld [vmem:[%s787_s2 + $0x8] sm:$0xff]  ;;  %vm305_vm3 = vcmask 261120   ;;  %v634_v43 = vmov 0.0|0.0   ;;  %v414_v0 = vlaneseq }
   0xc   :  { %553 = vmatprep.mubr.msk.f32.mxu0 %vm147_vm2, %v35_v10  ;;  %v37_v14 = vld [vmem:[%s787_s2 + $0x10] sm:$0xff]  ;;  %256 = vperm.xlu0 %607, %v246_v11   ;;  %v281_v15 = vld [vmem:[%s791_s6] sm:$0xff]  ;;  %v282_v16 = vld [vmem:[%s791_s6 + $0x8] sm:$0xff]  ;;  %vm635_vm4 = vmmov 0   ;;  %v636_v44 = vmov 0.0   ;;  %s637_s25 = smov [#allocation3]  }
   0xd   :  { %v38_v17 = vld [vmem:[%s787_s2 + $0x18] sm:$0xff]  ;;  %v283_v18 = vld [vmem:[%s791_s6 + $0x10] sm:$0xff]  ;;  %v408_v20 = vld [vmem:[#allocation2] sm:$0x1]  ;;  %v415_v1 = vshrl.u32 %v414_v0, 7  ;;  %s498_s26 = sshll.u32 %s637_s25, 4  ;;  %s499_s26 = int_to_ptr.vmem [resolvable:$true] %s498_s26 }
   0xe   :  { %266 = vperm.xlu1 %608, %v248_v12   ;;  %v284_v19 = vld [vmem:[%s791_s6 + $0x18] sm:$0xff]  ;;  %v277_v21 = vld [vmem:[%s790_s5] sm:$0xff]  ;;  %v278_v40 = vld [vmem:[%s790_s5 + $0x8] sm:$0xff]  ;;  %s609_s27 = scalar_lea.vmem %s499_s26, 16  ;;  %s613_s3 = scalar_lea.vmem %s499_s26, 32 }
   0xf   :  { %554 = vmatmul.mubr.msk.f32.vlgmr.msra.gmra.mrb[0].mxu0 %vm147_vm2, %v36_v13  ;;  %567 = vmatprep.mubr.msk.f32.mxu1 %vm305_vm3, %v277_v21  ;;  %v279_v41 = vld [vmem:[%s790_s5 + $0x10] sm:$0xff]  ;;  %v280_v42 = vld [vmem:[%s790_s5 + $0x18] sm:$0xff]  ;;  %v407_v63 = vld [vmem:[%s792_s7] sm:$0x1]  ;;  %v416_v2 = vsub.s32 0, %v415_v1  ;;  %p610_p0 = scmp.ne.s32.totalorder %s499_s26, %s609_s27  ;;  %p614_p1 = scmp.lt.s32.totalorder %s499_s26, %s499_s26 }
  0x10   :  { %556 = vmatprep.mubr.msk.f32.mxu0 %vm147_vm2, %v37_v14  ;;  %287 = vperm.xlu0 %607, %v281_v15   ;;  %p615_p2 = scmp.lt.s32.totalorder %s613_s3, %s609_s27 }
  0x12   :  { %292 = vperm.xlu1 %608, %v282_v16   ;;  %p616_p3 = por %p615_p2, %p614_p1 }
  0x13   :  { %557 = vmatmul.mubr.msk.f32.gmra.mrb[2].mxu0 %vm147_vm2, %v38_v17 }
  0x14   :  { %297 = vperm.xlu0 %607, %v283_v18   ;;  %p617_p4 = pnand %p616_p3, %p610_p0 }
  0x16   :  { %302 = vperm.xlu1 %608, %v284_v19  }
  0x18   :  { %411 = vperm.xlu0 %607, %v408_v20  }
  0x87   :  { %v252_v22 = vpop.permute.xlu0 %251 }
  0x89   :  { %v262_v23 = vpop.permute.xlu1 %261 }
  0x8b   :  { %v257_v24 = vpop.permute.xlu0 %256 }
  0x8d   :  { %v267_v30 = vpop.permute.xlu1 %266 }
  0x8f   :  { %v288_v46 = vpop.permute.xlu0 %287 }
  0x91   :  { %v293_v45 = vpop.permute.xlu1 %292 }
  0x93   :  { %v298_v55 = vpop.permute.xlu0 %297 }
  0x95   :  { %v303_v52 = vpop.permute.xlu1 %302 }
  0x97   :  { %v412_v3 = vpop.permute.xlu0 %411 }
  0x98   :  { %v417_v4 = vrot.slane %v412_v3, %v416_v2 }
  0xe2   :  { %v555_v25 = vpop.f32.mrb[0].mxu0 }
  0xe3   :  { %v270_v26 = vadd.f32 %v555_v25, %v257_v24  ;;  %v226_v27 = vpop.f32.mrb[1].mxu0 }
  0xe4   :  { %v269_v28 = vadd.f32 %v252_v22, %v226_v27 }
  0xe5   :  { %v274_v29 = vmax.f32 %v270_v26, 0.0 }
  0xe6   :  { %v273_v31 = vmax.f32 %v269_v28, 0.0  ;;  %v558_v32 = vpop.f32.mrb[2].mxu0 }
  0xe7   :  { %v272_v33 = vadd.f32 %v558_v32, %v267_v30  ;;  %v236_v34 = vpop.f32.mrb[3].mxu0 }
  0xe8   :  { %v271_v35 = vadd.f32 %v262_v23, %v236_v34  ;;  %v584_v36 = vpack.c.bf16 %v274_v29, %v273_v31 }
  0xe9   :  { %v276_v37 = vmax.f32 %v272_v33, 0.0 }
  0xea   :  { %v275_v38 = vmax.f32 %v271_v35, 0.0  ;;  %585 = vmatprep.subr.bf16.mxu1 %v584_v36 }
  0xeb   :  { %587 = vmatpush3.bf16.msra.mxu1 %v584_v36 }
  0xec   :  { %v588_v39 = vpack.c.bf16 %v276_v37, %v275_v38 }
  0xee   :  { %589 = vmatprep.subr.bf16.mxu1 %v588_v39 }
  0xef   :  { %591 = vmatpush3.bf16.msra.mxu1 %v588_v39 }
  0xf0   :  { %592 = vmatprep.subr.bf16.mxu1 %v634_v43 }
  0xf2   :  { %568 = vmatmul.mubr.msk.f32.vlgmr.msra.gmra.mrb[0].mxu1 %vm305_vm3, %v278_v40 }
  0xf3   :  { %570 = vmatprep.mubr.msk.f32.mxu1 %vm305_vm3, %v279_v41 }
  0xf6   :  { %571 = vmatmul.mubr.msk.f32.gmra.mrb[2].mxu1 %vm305_vm3, %v280_v42 }
  0xf7   :  { %581 = vmatprep.mubr.msk.f32.mxu1 %vm635_vm4, %v636_v44 }
 0x1c5   :  { %v569_v47 = vpop.f32.mrb[0].mxu1 }
 0x1c6   :  { %v390_v48 = vadd.f32 %v569_v47, %v293_v45  ;;  %v384_v49 = vpop.f32.mrb[1].mxu1 }
 0x1c7   :  { %v385_v50 = vadd.f32 %v384_v49, %v288_v46 }
 0x1c8   :  { %v404_v51 = vmax.f32 %v390_v48, 0.0 }
 0x1c9   :  { %v403_v53 = vmax.f32 %v385_v50, 0.0  ;;  %v572_v54 = vpop.f32.mrb[2].mxu1 }
 0x1ca   :  { %v400_v56 = vadd.f32 %v572_v54, %v303_v52  ;;  %v394_v57 = vpop.f32.mrb[3].mxu1 }
 0x1cb   :  { %v593_v58 = vpack.c.bf16 %v404_v51, %v403_v53  ;;  %v395_v59 = vadd.f32 %v394_v57, %v298_v55 }
 0x1cc   :  { %v406_v60 = vmax.f32 %v400_v56, 0.0 }
 0x1cd   :  { %v405_v61 = vmax.f32 %v395_v59, 0.0  ;;  %594 = vmatpush3.bf16.msra.mxu1 %v593_v58 }
 0x1ce   :  { %595 = vmatprep.subr.bf16.mxu1 %v634_v43 }
 0x1cf   :  { %v596_v62 = vpack.c.bf16 %v406_v60, %v405_v61 }
 0x1d1   :  { %597 = vmatpush3.bf16.msra.mxu1 %v596_v62 }
 0x1d4   :  { %582 = vmatmul.mubr.msk.f32.vlgmr.msra.gmra.mrb[4].mxu1 %vm305_vm3, %v407_v63 }
 0x2a7   :  { %v487_v5 = vpop.f32.mrb[4].mxu1 }
 0x2a8   :  { %v488_v6 = vadd.f32 %v487_v5, %v417_v4  ;;  %v583_v7 = vpop.f32.mrb[5].mxu1 }
 0x2aa   :  { %491 = vst [vmem:[#allocation3] sm:$0x1] %v488_v6 }
 0x2ab   :  { %620 = shalt.err (!%p617_p4)
}
 0x2ac   :  { %s621_s29 = scalar_lea.hbm %s794_s9, 16 }
 0x2ad   :  { %p622_p5 = scmp.ne.s32.totalorder %s794_s9, %s621_s29  ;;  %p625_p6 = scmp.lt.u32.totalorder %s621_s29, %s794_s9 }
 0x2af   :  { %p627_p7 = pnand %p625_p6, %p622_p5 }
 0x2b1   :  { %630 = shalt.err (!%p627_p7)
}
 0x2b2   :  { %501 = dma.vmem_to_hbm [thread:$0]  %s499_s26, 16, %s794_s9, [#allocation4]  }
 0x2b3   :  { %631 = dma.done.wait [#allocation4], 16  }
 0x2b4   :  { %632 = vsyncadd [#allocation4], 4294967280 }
 0x2b5   :  { %505 = vsyncpa [#allocation4], 1 }

</bundles_post_ra>
